<compile_context>
chip_gen: v7x
topology: tpu7x:2x2x1
jax: 0.10.0
libtpu: 0.0.40
codegen_flags: <defaults>
</compile_context>

<pallas_src>
import functools

import jax
import jax.numpy as jnp
from jax import lax
from jax.experimental import pallas as pl
from jax.experimental.pallas import tpu as pltpu


def _round_up(x, m):
    return ((x + m - 1) // m) * m


def _init_disen_kernel(x_ref, w_ref, b_ref, o_ref, *, R, K, L):
    # x_ref: (TN, R*d0)   w_ref: (R*d0, R*K*L)   b_ref: (1, R*K*L)   o_ref: (TN, R*K*L)
    s = jnp.dot(x_ref[...], w_ref[...], preferred_element_type=jnp.float32)
    a = jnp.maximum(s + b_ref[...], 0.0)  # act_fn = ReLU

    # L2 normalization across the K factor axis, independently for each of the R
    # row-folds packed along lanes. R, K, L are small static ints -> unrolled.
    for r in range(R):
        base = r * K * L
        sq = jnp.zeros((a.shape[0], L), jnp.float32)
        chunks = []
        for k in range(K):
            c = a[:, base + k * L: base + (k + 1) * L]
            chunks.append(c)
            sq = sq + c * c
        # max(sqrt(sq), 1e-12) followed by a divide  ==  rsqrt(max(sq, 1e-24)) * x.
        inv = lax.rsqrt(jnp.maximum(sq, 1e-24))  # EUP op; hides under DMA
        for k in range(K):
            o_ref[:, base + k * L: base + (k + 1) * L] = chunks[k] * inv


def init_disen_prepare(disen_weights, disen_bias):
    """One-time parameter prep (hoisted out of the per-call forward path).

    disen_weights: (K, d_0, L), disen_bias: (1, K, L), with L = d_in // K.
    Returns (w_bd, b_tiled, (K, L, R, d0)).
    """
    K, d0, L = disen_weights.shape
    # Flatten so out[:, k*L + l] = sum_j X[:, j] * W[k, j, l].
    w_flat = jnp.transpose(disen_weights, (1, 0, 2)).reshape(d0, K * L)
    b_flat = disen_bias.reshape(1, K * L)

    # Lane-folding factor: pack R rows into the 128-lane axis when K*L is narrow.
    KL = K * L
    R = 128 // KL if (KL < 128 and 128 % KL == 0) else 1

    # Block-diagonal weight (R*d0, R*K*L) and lane-tiled bias (1, R*K*L).
    w_bd = jnp.kron(jnp.eye(R, dtype=w_flat.dtype), w_flat)
    b_tiled = jnp.tile(b_flat, (1, R))
    return w_bd, b_tiled, (K, L, R, d0)


def init_disen_forward(X, w_bd, b_tiled, *, K, L, R, d0, tn=512):
    """X: (N, d_in) float32 -> (N, K, L) float32."""
    N, d_in = X.shape
    assert d_in == d0, "module requires d_in == d_0 (einsum contracts X with W's d_0 axis)"
    assert d_in == K * L, "module requires d_in == K * (d_in // K)"

    KL = K * L
    D_lanes = R * d_in      # kernel input lane width
    W_lanes = R * KL        # kernel output lane width

    Nf = -(-N // R)         # rows after lane folding (ceil)

    # VMEM budget: double-buffered (x, out) tiles + double-buffered resident weights/bias.
    row_bytes = (D_lanes + W_lanes) * 4
    fixed_bytes = (D_lanes * W_lanes + W_lanes) * 4
    budget = 40 * 1024 * 1024  # headroom below v7x's 64 MiB physical VMEM
    tn_eff = max(8, (tn // 8) * 8)
    while tn_eff > 8 and 2 * tn_eff * row_bytes + 2 * fixed_bytes > budget:
        tn_eff //= 2
    tn_eff = min(tn_eff, _round_up(Nf, 8))

    Nf_pad = _round_up(Nf, tn_eff)
    pad_rows = Nf_pad * R - N
    Xp = jnp.pad(X, ((0, pad_rows), (0, 0))) if pad_rows else X
    Xf = Xp.reshape(Nf_pad, D_lanes)  # rows are contiguous -> cheap reshape

    cost = pl.CostEstimate(
        flops=2 * N * d_in * KL + 6 * N * KL,
        transcendentals=N * L,
        bytes_accessed=4 * (N * d_in + d_in * KL + KL + N * KL),
    )

    out_flat = pl.pallas_call(
        functools.partial(_init_disen_kernel, R=R, K=K, L=L),
        out_shape=jax.ShapeDtypeStruct((Nf_pad, W_lanes), jnp.float32),
        grid_spec=pl.GridSpec(
            grid=(Nf_pad // tn_eff,),
            in_specs=[
                pl.BlockSpec((tn_eff, D_lanes), lambda i: (i, 0)),
                pl.BlockSpec((D_lanes, W_lanes), lambda i: (0, 0)),
                pl.BlockSpec((1, W_lanes), lambda i: (0, 0)),
            ],
            out_specs=pl.BlockSpec((tn_eff, W_lanes), lambda i: (i, 0)),
        ),
        compiler_params=pltpu.CompilerParams(
            dimension_semantics=("parallel",),     # shards grid across v7x's 2 TCs
            vmem_limit_bytes=48 * 1024 * 1024,     # explicit: > v5e 16 MiB default, < v7x 64 MiB
        ),
        cost_estimate=cost,
    )(Xf, w_bd, b_tiled)

    # Unfold lanes back to rows (free reshape), drop row padding.
    return out_flat.reshape(Nf_pad * R, KL)[:N].reshape(N, K, L)


def _reference(X, W, b):
    # Pure-JAX reference of the PyTorch forward (ReLU act, F.normalize dim=1).
    f0 = jnp.einsum("ij,kjl->ikl", X, W) + b
    f0 = jnp.maximum(f0, 0.0)
    norm = jnp.maximum(jnp.sqrt(jnp.sum(f0 * f0, axis=1, keepdims=True)), 1e-12)
    return f0 / norm


if __name__ == "__main__":
    # Small shapes consistent with the module: d_in = d_0 = 32, K = 4 factors, N = 18 nodes.
    # (N = 18 deliberately not a multiple of the lane-fold factor to exercise padding.)
    N, d_in, d_0, K = 18, 32, 32, 4
    L = d_in // K

    key = jax.random.PRNGKey(0)
    kx, kw, kb = jax.random.split(key, 3)

    X = jax.random.normal(kx, (N, d_in), dtype=jnp.float32)

    # Parameters mirroring nn.Parameter + xavier_uniform_; bias made nonzero (as after
    # training) to exercise the lane-tiled bias path.
    fan_in, fan_out = d_0 * L, K * L
    bound = (6.0 / (fan_in + fan_out)) ** 0.5
    disen_weights = jax.random.uniform(
        kw, (K, d_0, L), dtype=jnp.float32, minval=-bound, maxval=bound
    )
    disen_bias = 0.1 * jax.random.normal(kb, (1, K, L), dtype=jnp.float32)

    # One-time parameter prep (hoisted out of the forward path).
    w_bd, b_tiled, (K_, L_, R_, d0_) = init_disen_prepare(disen_weights, disen_bias)

    fwd = jax.jit(
        functools.partial(init_disen_forward, K=K_, L=L_, R=R_, d0=d0_, tn=512)
    )
    out = jax.block_until_ready(fwd(X, w_bd, b_tiled))

    ref = _reference(X, disen_weights, disen_bias)
    assert out.shape == (N, K, L)
    assert jnp.allclose(out, ref, atol=1e-5, rtol=1e-5), "mismatch vs reference"

    print("KERNEL_OK")
</pallas_src>

<mosaic_0001>
module attributes {stable_mosaic.version = 11 : i64} {
  func.func @_init_disen_kernel(%arg0: i32, %arg1: memref<8x128xf32, #tpu.memory_space<vmem>>, %arg2: memref<128x128xf32, #tpu.memory_space<vmem>>, %arg3: memref<1x128xf32, #tpu.memory_space<vmem>>, %arg4: memref<8x128xf32, #tpu.memory_space<vmem>>) attributes {dimension_semantics = [#tpu.dimension_semantics<parallel>], iteration_bounds = array<i64: 1>, scalar_prefetch = 0 : i64, scratch_operands = 0 : i64, tpu.core_type = #tpu.core_type<tc>, window_params = [{transform_indices = @transform_0, window_bounds = array<i64: 8, 128>}, {pipeline_mode = #tpu.pipeline_mode<synchronous>, transform_indices = @transform_1, window_bounds = array<i64: 128, 128>}, {pipeline_mode = #tpu.pipeline_mode<synchronous>, transform_indices = @transform_2, window_bounds = array<i64: 1, 128>}, {transform_indices = @transform_3, window_bounds = array<i64: 8, 128>}]} {
    %c0 = arith.constant 0 : index
    %c0_0 = arith.constant 0 : index
    %0 = vector.load %arg1[%c0, %c0_0] : memref<8x128xf32, #tpu.memory_space<vmem>>, vector<8x128xf32>
    %c0_1 = arith.constant 0 : index
    %c0_2 = arith.constant 0 : index
    %1 = vector.load %arg2[%c0_1, %c0_2] : memref<128x128xf32, #tpu.memory_space<vmem>>, vector<128x128xf32>
    %cst = arith.constant dense<0.000000e+00> : vector<8x128xf32>
    %2 = tpu.matmul %0, %1, %cst {dimension_numbers = #tpu.dot_dimension_numbers<[1], [0], [0], [1], [0, 0, 1, 1], [], []>} : vector<8x128xf32>, vector<128x128xf32>, vector<8x128xf32> -> vector<8x128xf32>
    %c0_3 = arith.constant 0 : index
    %c0_4 = arith.constant 0 : index
    %3 = vector.load %arg3[%c0_3, %c0_4] : memref<1x128xf32, #tpu.memory_space<vmem>>, vector<1x128xf32>
    %4 = vector.broadcast %3 : vector<1x128xf32> to vector<8x128xf32>
    %5 = arith.addf %2, %4 : vector<8x128xf32>
    %cst_5 = arith.constant 0.000000e+00 : f32
    %6 = vector.broadcast %cst_5 : f32 to vector<8x128xf32>
    %7 = arith.maximumf %5, %6 : vector<8x128xf32>
    %cst_6 = arith.constant 0.000000e+00 : f32
    %8 = vector.broadcast %cst_6 : f32 to vector<8x8xf32>
    %9 = vector.extract_strided_slice %7 {offsets = [0, 0], sizes = [8, 8], strides = [1, 1]} : vector<8x128xf32> to vector<8x8xf32>
    %10 = arith.mulf %9, %9 : vector<8x8xf32>
    %11 = arith.addf %8, %10 : vector<8x8xf32>
    %12 = vector.extract_strided_slice %7 {offsets = [0, 8], sizes = [8, 8], strides = [1, 1]} : vector<8x128xf32> to vector<8x8xf32>
    %13 = arith.mulf %12, %12 : vector<8x8xf32>
    %14 = arith.addf %11, %13 : vector<8x8xf32>
    %15 = vector.extract_strided_slice %7 {offsets = [0, 16], sizes = [8, 8], strides = [1, 1]} : vector<8x128xf32> to vector<8x8xf32>
    %16 = arith.mulf %15, %15 : vector<8x8xf32>
    %17 = arith.addf %14, %16 : vector<8x8xf32>
    %18 = vector.extract_strided_slice %7 {offsets = [0, 24], sizes = [8, 8], strides = [1, 1]} : vector<8x128xf32> to vector<8x8xf32>
    %19 = arith.mulf %18, %18 : vector<8x8xf32>
    %20 = arith.addf %17, %19 : vector<8x8xf32>
    %cst_7 = arith.constant 1.000000e-24 : f32
    %21 = vector.broadcast %cst_7 : f32 to vector<8x8xf32>
    %22 = arith.maximumf %20, %21 : vector<8x8xf32>
    %23 = math.rsqrt %22 : vector<8x8xf32>
    %24 = arith.mulf %9, %23 : vector<8x8xf32>
    %c0_8 = arith.constant 0 : index
    %c0_9 = arith.constant 0 : index
    %25 = vector.load %arg4[%c0_8, %c0_9] : memref<8x128xf32, #tpu.memory_space<vmem>>, vector<8x8xf32>
    tpu.vector_store %arg4[%c0_8, %c0_9], %24 {strides = array<i32>} : memref<8x128xf32, #tpu.memory_space<vmem>>, vector<8x8xf32>,
    %26 = arith.mulf %12, %23 : vector<8x8xf32>
    %c0_10 = arith.constant 0 : index
    %c8 = arith.constant 8 : index
    %27 = vector.load %arg4[%c0_10, %c8] : memref<8x128xf32, #tpu.memory_space<vmem>>, vector<8x8xf32>
    tpu.vector_store %arg4[%c0_10, %c8], %26 {strides = array<i32>} : memref<8x128xf32, #tpu.memory_space<vmem>>, vector<8x8xf32>,
    %28 = arith.mulf %15, %23 : vector<8x8xf32>
    %c0_11 = arith.constant 0 : index
    %c16 = arith.constant 16 : index
    %29 = vector.load %arg4[%c0_11, %c16] : memref<8x128xf32, #tpu.memory_space<vmem>>, vector<8x8xf32>
    tpu.vector_store %arg4[%c0_11, %c16], %28 {strides = array<i32>} : memref<8x128xf32, #tpu.memory_space<vmem>>, vector<8x8xf32>,
    %30 = arith.mulf %18, %23 : vector<8x8xf32>
    %c0_12 = arith.constant 0 : index
    %c24 = arith.constant 24 : index
    %31 = vector.load %arg4[%c0_12, %c24] : memref<8x128xf32, #tpu.memory_space<vmem>>, vector<8x8xf32>
    tpu.vector_store %arg4[%c0_12, %c24], %30 {strides = array<i32>} : memref<8x128xf32, #tpu.memory_space<vmem>>, vector<8x8xf32>,
    %cst_13 = arith.constant 0.000000e+00 : f32
    %32 = vector.broadcast %cst_13 : f32 to vector<8x8xf32>
    %33 = vector.extract_strided_slice %7 {offsets = [0, 32], sizes = [8, 8], strides = [1, 1]} : vector<8x128xf32> to vector<8x8xf32>
    %34 = arith.mulf %33, %33 : vector<8x8xf32>
    %35 = arith.addf %32, %34 : vector<8x8xf32>
    %36 = vector.extract_strided_slice %7 {offsets = [0, 40], sizes = [8, 8], strides = [1, 1]} : vector<8x128xf32> to vector<8x8xf32>
    %37 = arith.mulf %36, %36 : vector<8x8xf32>
    %38 = arith.addf %35, %37 : vector<8x8xf32>
    %39 = vector.extract_strided_slice %7 {offsets = [0, 48], sizes = [8, 8], strides = [1, 1]} : vector<8x128xf32> to vector<8x8xf32>
    %40 = arith.mulf %39, %39 : vector<8x8xf32>
    %41 = arith.addf %38, %40 : vector<8x8xf32>
    %42 = vector.extract_strided_slice %7 {offsets = [0, 56], sizes = [8, 8], strides = [1, 1]} : vector<8x128xf32> to vector<8x8xf32>
    %43 = arith.mulf %42, %42 : vector<8x8xf32>
    %44 = arith.addf %41, %43 : vector<8x8xf32>
    %cst_14 = arith.constant 1.000000e-24 : f32
    %45 = vector.broadcast %cst_14 : f32 to vector<8x8xf32>
    %46 = arith.maximumf %44, %45 : vector<8x8xf32>
    %47 = math.rsqrt %46 : vector<8x8xf32>
    %48 = arith.mulf %33, %47 : vector<8x8xf32>
    %c0_15 = arith.constant 0 : index
    %c32 = arith.constant 32 : index
    %49 = vector.load %arg4[%c0_15, %c32] : memref<8x128xf32, #tpu.memory_space<vmem>>, vector<8x8xf32>
    tpu.vector_store %arg4[%c0_15, %c32], %48 {strides = array<i32>} : memref<8x128xf32, #tpu.memory_space<vmem>>, vector<8x8xf32>,
    %50 = arith.mulf %36, %47 : vector<8x8xf32>
    %c0_16 = arith.constant 0 : index
    %c40 = arith.constant 40 : index
    %51 = vector.load %arg4[%c0_16, %c40] : memref<8x128xf32, #tpu.memory_space<vmem>>, vector<8x8xf32>
    tpu.vector_store %arg4[%c0_16, %c40], %50 {strides = array<i32>} : memref<8x128xf32, #tpu.memory_space<vmem>>, vector<8x8xf32>,
    %52 = arith.mulf %39, %47 : vector<8x8xf32>
    %c0_17 = arith.constant 0 : index
    %c48 = arith.constant 48 : index
    %53 = vector.load %arg4[%c0_17, %c48] : memref<8x128xf32, #tpu.memory_space<vmem>>, vector<8x8xf32>
    tpu.vector_store %arg4[%c0_17, %c48], %52 {strides = array<i32>} : memref<8x128xf32, #tpu.memory_space<vmem>>, vector<8x8xf32>,
    %54 = arith.mulf %42, %47 : vector<8x8xf32>
    %c0_18 = arith.constant 0 : index
    %c56 = arith.constant 56 : index
    %55 = vector.load %arg4[%c0_18, %c56] : memref<8x128xf32, #tpu.memory_space<vmem>>, vector<8x8xf32>
    tpu.vector_store %arg4[%c0_18, %c56], %54 {strides = array<i32>} : memref<8x128xf32, #tpu.memory_space<vmem>>, vector<8x8xf32>,
    %cst_19 = arith.constant 0.000000e+00 : f32
    %56 = vector.broadcast %cst_19 : f32 to vector<8x8xf32>
    %57 = vector.extract_strided_slice %7 {offsets = [0, 64], sizes = [8, 8], strides = [1, 1]} : vector<8x128xf32> to vector<8x8xf32>
    %58 = arith.mulf %57, %57 : vector<8x8xf32>
    %59 = arith.addf %56, %58 : vector<8x8xf32>
    %60 = vector.extract_strided_slice %7 {offsets = [0, 72], sizes = [8, 8], strides = [1, 1]} : vector<8x128xf32> to vector<8x8xf32>
    %61 = arith.mulf %60, %60 : vector<8x8xf32>
    %62 = arith.addf %59, %61 : vector<8x8xf32>
    %63 = vector.extract_strided_slice %7 {offsets = [0, 80], sizes = [8, 8], strides = [1, 1]} : vector<8x128xf32> to vector<8x8xf32>
    %64 = arith.mulf %63, %63 : vector<8x8xf32>
    %65 = arith.addf %62, %64 : vector<8x8xf32>
    %66 = vector.extract_strided_slice %7 {offsets = [0, 88], sizes = [8, 8], strides = [1, 1]} : vector<8x128xf32> to vector<8x8xf32>
    %67 = arith.mulf %66, %66 : vector<8x8xf32>
    %68 = arith.addf %65, %67 : vector<8x8xf32>
    %cst_20 = arith.constant 1.000000e-24 : f32
    %69 = vector.broadcast %cst_20 : f32 to vector<8x8xf32>
    %70 = arith.maximumf %68, %69 : vector<8x8xf32>
    %71 = math.rsqrt %70 : vector<8x8xf32>
    %72 = arith.mulf %57, %71 : vector<8x8xf32>
    %c0_21 = arith.constant 0 : index
    %c64 = arith.constant 64 : index
    %73 = vector.load %arg4[%c0_21, %c64] : memref<8x128xf32, #tpu.memory_space<vmem>>, vector<8x8xf32>
    tpu.vector_store %arg4[%c0_21, %c64], %72 {strides = array<i32>} : memref<8x128xf32, #tpu.memory_space<vmem>>, vector<8x8xf32>,
    %74 = arith.mulf %60, %71 : vector<8x8xf32>
    %c0_22 = arith.constant 0 : index
    %c72 = arith.constant 72 : index
    %75 = vector.load %arg4[%c0_22, %c72] : memref<8x128xf32, #tpu.memory_space<vmem>>, vector<8x8xf32>
    tpu.vector_store %arg4[%c0_22, %c72], %74 {strides = array<i32>} : memref<8x128xf32, #tpu.memory_space<vmem>>, vector<8x8xf32>,
    %76 = arith.mulf %63, %71 : vector<8x8xf32>
    %c0_23 = arith.constant 0 : index
    %c80 = arith.constant 80 : index
    %77 = vector.load %arg4[%c0_23, %c80] : memref<8x128xf32, #tpu.memory_space<vmem>>, vector<8x8xf32>
    tpu.vector_store %arg4[%c0_23, %c80], %76 {strides = array<i32>} : memref<8x128xf32, #tpu.memory_space<vmem>>, vector<8x8xf32>,
    %78 = arith.mulf %66, %71 : vector<8x8xf32>
    %c0_24 = arith.constant 0 : index
    %c88 = arith.constant 88 : index
    %79 = vector.load %arg4[%c0_24, %c88] : memref<8x128xf32, #tpu.memory_space<vmem>>, vector<8x8xf32>
    tpu.vector_store %arg4[%c0_24, %c88], %78 {strides = array<i32>} : memref<8x128xf32, #tpu.memory_space<vmem>>, vector<8x8xf32>,
    %cst_25 = arith.constant 0.000000e+00 : f32
    %80 = vector.broadcast %cst_25 : f32 to vector<8x8xf32>
    %81 = vector.extract_strided_slice %7 {offsets = [0, 96], sizes = [8, 8], strides = [1, 1]} : vector<8x128xf32> to vector<8x8xf32>
    %82 = arith.mulf %81, %81 : vector<8x8xf32>
    %83 = arith.addf %80, %82 : vector<8x8xf32>
    %84 = vector.extract_strided_slice %7 {offsets = [0, 104], sizes = [8, 8], strides = [1, 1]} : vector<8x128xf32> to vector<8x8xf32>
    %85 = arith.mulf %84, %84 : vector<8x8xf32>
    %86 = arith.addf %83, %85 : vector<8x8xf32>
    %87 = vector.extract_strided_slice %7 {offsets = [0, 112], sizes = [8, 8], strides = [1, 1]} : vector<8x128xf32> to vector<8x8xf32>
    %88 = arith.mulf %87, %87 : vector<8x8xf32>
    %89 = arith.addf %86, %88 : vector<8x8xf32>
    %90 = vector.extract_strided_slice %7 {offsets = [0, 120], sizes = [8, 8], strides = [1, 1]} : vector<8x128xf32> to vector<8x8xf32>
    %91 = arith.mulf %90, %90 : vector<8x8xf32>
    %92 = arith.addf %89, %91 : vector<8x8xf32>
    %cst_26 = arith.constant 1.000000e-24 : f32
    %93 = vector.broadcast %cst_26 : f32 to vector<8x8xf32>
    %94 = arith.maximumf %92, %93 : vector<8x8xf32>
    %95 = math.rsqrt %94 : vector<8x8xf32>
    %96 = arith.mulf %81, %95 : vector<8x8xf32>
    %c0_27 = arith.constant 0 : index
    %c96 = arith.constant 96 : index
    %97 = vector.load %arg4[%c0_27, %c96] : memref<8x128xf32, #tpu.memory_space<vmem>>, vector<8x8xf32>
    tpu.vector_store %arg4[%c0_27, %c96], %96 {strides = array<i32>} : memref<8x128xf32, #tpu.memory_space<vmem>>, vector<8x8xf32>,
    %98 = arith.mulf %84, %95 : vector<8x8xf32>
    %c0_28 = arith.constant 0 : index
    %c104 = arith.constant 104 : index
    %99 = vector.load %arg4[%c0_28, %c104] : memref<8x128xf32, #tpu.memory_space<vmem>>, vector<8x8xf32>
    tpu.vector_store %arg4[%c0_28, %c104], %98 {strides = array<i32>} : memref<8x128xf32, #tpu.memory_space<vmem>>, vector<8x8xf32>,
    %100 = arith.mulf %87, %95 : vector<8x8xf32>
    %c0_29 = arith.constant 0 : index
    %c112 = arith.constant 112 : index
    %101 = vector.load %arg4[%c0_29, %c112] : memref<8x128xf32, #tpu.memory_space<vmem>>, vector<8x8xf32>
    tpu.vector_store %arg4[%c0_29, %c112], %100 {strides = array<i32>} : memref<8x128xf32, #tpu.memory_space<vmem>>, vector<8x8xf32>,
    %102 = arith.mulf %90, %95 : vector<8x8xf32>
    %c0_30 = arith.constant 0 : index
    %c120 = arith.constant 120 : index
    %103 = vector.load %arg4[%c0_30, %c120] : memref<8x128xf32, #tpu.memory_space<vmem>>, vector<8x8xf32>
    tpu.vector_store %arg4[%c0_30, %c120], %102 {strides = array<i32>} : memref<8x128xf32, #tpu.memory_space<vmem>>, vector<8x8xf32>,
    return
  }
  func.func @transform_0(%arg0: i32) -> (i32, i32) {
    %c0_i32 = arith.constant 0 : i32
    %c0_i32_0 = arith.constant 0 : i32
    return %arg0, %c0_i32 : i32, i32
  }
  func.func @transform_1(%arg0: i32) -> (i32, i32) {
    %c0_i32 = arith.constant 0 : i32
    %c0_i32_0 = arith.constant 0 : i32
    %c0_i32_1 = arith.constant 0 : i32
    return %c0_i32, %c0_i32_0 : i32, i32
  }
  func.func @transform_2(%arg0: i32) -> (i32, i32) {
    %c0_i32 = arith.constant 0 : i32
    %c0_i32_0 = arith.constant 0 : i32
    %c0_i32_1 = arith.constant 0 : i32
    return %c0_i32, %c0_i32_0 : i32, i32
  }
  func.func @transform_3(%arg0: i32) -> (i32, i32) {
    %c0_i32 = arith.constant 0 : i32
    %c0_i32_0 = arith.constant 0 : i32
    return %arg0, %c0_i32 : i32, i32
  }
}

</mosaic_0001>

<bundles_post_ra>
// kernel: init_disen_forward.1
= control target key start
LH: loop header
LB: loop body
LE: loop exit
PB: predicated region body
PF: predicated region fallthrough
CT: control target
= control target key end

     0   :  { %8 = vsyncpa [#allocation3], 0  ;;  %s305_s12 = smov [#allocation2]   ;;  %s404_s0 = inlined_call_operand.vmem [shape: f32[8,128], index: 0, kind: input, shape index: {}]   ;;  %s405_s1 = inlined_call_operand.hbm [shape: f32[128,128], index: 1, kind: input, shape index: {}]   ;;  %s406_s2 = inlined_call_operand.vmem [shape: f32[1,128], index: 2, kind: input, shape index: {}]   ;;  %s407_s3 = inlined_call_operand.vmem [shape: f32[8,128], index: 3, kind: output, shape index: {}]  }
   0x1   :  { %s16_s13 = sshll.u32 %s305_s12, 4  ;;  %s281_s16 = scalar_lea.hbm %s405_s1, 2048  ;;  %s17_s13 = int_to_ptr.vmem [resolvable:$true] %s16_s13 }
   0x2   :  { %p282_p0 = scmp.ne.s32.totalorder %s405_s1, %s281_s16  ;;  %p285_p1 = scmp.lt.u32.totalorder %s281_s16, %s405_s1 }
   0x4   :  { %p287_p2 = pnand %p285_p1, %p282_p0 }
   0x6   :  { %290 = shalt.err (!%p287_p2)
}
   0x7   :  { %s291_s21 = scalar_lea.vmem %s17_s13, 2048  ;;  %p296_p4 = scmp.lt.s32.totalorder %s17_s13, %s17_s13 }
   0x8   :  { %p292_p3 = scmp.ne.s32.totalorder %s17_s13, %s291_s21  ;;  %p297_p5 = scmp.lt.s32.totalorder %s291_s21, %s291_s21 }
   0xa   :  { %p298_p6 = por %p297_p5, %p296_p4 }
   0xc   :  { %p299_p7 = pnand %p298_p6, %p292_p3 }
   0xe   :  { %302 = shalt.err (!%p299_p7)
}
   0xf   :  { %s306_s22 = smov 128   ;;  %s307_s23 = smov 8  }
  0x10   :  { %22 = dma.hbm_to_vmem [thread:$0]  %s405_s1, 2048, %s17_s13, [#allocation3], %s306_s22, %s306_s22, %s307_s23  }
  0x11   :  { %303 = dma.done.wait [#allocation3], 2048  }
  0x12   :  { %304 = vsyncadd [#allocation3], 4294965248  ;;  %v308_v0 = vmov 0.0|0.0   ;;  %vm309_vm0 = vmmov 0   ;;  %v310_v1 = vmov 0.0   ;;  %v29_v2 = vld [vmem:[#allocation2] sm:$0xff] }
  0x13   :  { %244 = vmatprep.subr.bf16.mxu0 %v308_v0  ;;  %241 = vmatprep.mubr.msk.f32.mxu0 %vm309_vm0, %v310_v1  ;;  %v30_v3 = vld [vmem:[#allocation2 + $0x8] sm:$0xff]  ;;  %v31_v4 = vld [vmem:[#allocation2 + $0x10] sm:$0xff]  ;;  %v32_v6 = vld [vmem:[#allocation2 + $0x18] sm:$0xff]  ;;  %s311_s29 = smov 104   ;;  %s312_s30 = smov 120   ;;  %vm141_vm1 = vcmask 64512  }
  0x14   :  { %v245_v5 = vpack.c.bf16 %v30_v3, %v29_v2  ;;  %v248_v7 = vpack.c.bf16 %v32_v6, %v31_v4  ;;  %v33_v8 = vld [vmem:[#allocation2 + $0x20] sm:$0xff]  ;;  %v34_v9 = vld [vmem:[#allocation2 + $0x28] sm:$0xff]  ;;  %v35_v11 = vld [vmem:[#allocation2 + $0x30] sm:$0xff]  ;;  %s313_s4 = smov 112   ;;  %s315_s6 = smov 24   ;;  %vm148_vm2 = vcmask 130112  }
  0x15   :  { %v251_v10 = vpack.c.bf16 %v34_v9, %v33_v8  ;;  %v36_v12 = vld [vmem:[#allocation2 + $0x38] sm:$0xff]  ;;  %v37_v14 = vld [vmem:[#allocation2 + $0x40] sm:$0xff]  ;;  %v38_v15 = vld [vmem:[#allocation2 + $0x48] sm:$0xff]  ;;  %vm154_vm3 = vcmask 195712   ;;  %vm160_vm4 = vcmask 261312   ;;  %vm162_vm5 = vcmask 326912  }
  0x16   :  { %246 = vmatpush3.bf16.msra.mxu0 %v245_v5  ;;  %v254_v13 = vpack.c.bf16 %v36_v12, %v35_v11  ;;  %v257_v16 = vpack.c.bf16 %v38_v15, %v37_v14  ;;  %v39_v17 = vld [vmem:[#allocation2 + $0x50] sm:$0xff]  ;;  %v40_v18 = vld [vmem:[#allocation2 + $0x58] sm:$0xff]  ;;  %v41_v20 = vld [vmem:[#allocation2 + $0x60] sm:$0xff]  ;;  %vm164_vm6 = vcmask 392512   ;;  %vm166_vm7 = vcmask 458112  }
  0x17   :  { %247 = vmatprep.subr.bf16.mxu0 %v308_v0  ;;  %v260_v19 = vpack.c.bf16 %v40_v18, %v39_v17  ;;  %v42_v21 = vld [vmem:[#allocation2 + $0x68] sm:$0xff]  ;;  %v43_v23 = vld [vmem:[#allocation2 + $0x70] sm:$0xff]  ;;  %v44_v24 = vld [vmem:[#allocation2 + $0x78] sm:$0xff]  ;;  %vm168_vm8 = vcmask 523712   ;;  %vm170_vm9 = vcmask 589312   ;;  %vm172_vm10 = vcmask 654912  }
  0x18   :  { %v263_v22 = vpack.c.bf16 %v42_v21, %v41_v20  ;;  %v266_v25 = vpack.c.bf16 %v44_v24, %v43_v23  ;;  %v28_v26 = vld [vmem:[%s404_s0] sm:$0xff]  ;;  %s314_s0 = smov 16   ;;  %vm174_vm11 = vcmask 720512   ;;  %vm176_vm12 = vcmask 786112  }
  0x19   :  { %v191_v27 = vld [vmem:[%s406_s2] ss:$0 sm:$0xff]  ;;  %vm178_vm13 = vcmask 851712   ;;  %vm180_vm14 = vcmask 917312   ;;  %vm182_vm15 = vcmask 982912   ;;  %vm184_vm0 = vcmask 1048512  }
  0x1a   :  { %249 = vmatpush3.bf16.msra.mxu0 %v248_v7 }
  0x1b   :  { %250 = vmatprep.subr.bf16.mxu0 %v308_v0 }
  0x1e   :  { %252 = vmatpush3.bf16.msra.mxu0 %v251_v10 }
  0x1f   :  { %253 = vmatprep.subr.bf16.mxu0 %v308_v0 }
  0x22   :  { %255 = vmatpush3.bf16.msra.mxu0 %v254_v13 }
  0x23   :  { %256 = vmatprep.subr.bf16.mxu0 %v308_v0 }
  0x26   :  { %258 = vmatpush3.bf16.msra.mxu0 %v257_v16 }
  0x27   :  { %259 = vmatprep.subr.bf16.mxu0 %v308_v0 }
  0x2a   :  { %261 = vmatpush3.bf16.msra.mxu0 %v260_v19 }
  0x2b   :  { %262 = vmatprep.subr.bf16.mxu0 %v308_v0 }
  0x2e   :  { %264 = vmatpush3.bf16.msra.mxu0 %v263_v22 }
  0x2f   :  { %265 = vmatprep.subr.bf16.mxu0 %v308_v0 }
  0x32   :  { %267 = vmatpush3.bf16.msra.mxu0 %v266_v25 }
  0x35   :  { %242 = vmatmul.mubr.f32.vlgmr.msra.gmra.mrb[0].mxu0 %v28_v26 }
 0x108   :  { %v118_v28 = vpop.f32.mrb[0].mxu0 }
 0x109   :  { %v119_v29 = vadd.f32 %v191_v27, %v118_v28  ;;  %v243_v30 = vpop.f32.mrb[1].mxu0 }
 0x10b   :  { %v122_v31 = vmax.f32 %v119_v29, 0.0 }
 0x10d   :  { %v123_v32 = vmul.f32 %v122_v31, %v122_v31 }
 0x10f   :  { %134 = vrot.lane.b32.xlu1 %v123_v32, %s311_s29  ;;  %126 = vrot.lane.b32.xlu0 %v123_v32, %s312_s30 }
 0x113   :  { %130 = vrot.lane.b32.xlu0 %v123_v32, %s313_s4 }
 0x181   :  { %v127_v33 = vpop.permute.xlu0 %126  ;;  %v135_v37 = vpop.permute.xlu1 %134 }
 0x182   :  { %v129_v34 = vadd.f32 %v127_v33, %v123_v32 }
 0x185   :  { %v131_v35 = vpop.permute.xlu0 %130 }
 0x186   :  { %v133_v36 = vadd.f32 %v131_v35, %v129_v34 }
 0x188   :  { %v137_v38 = vadd.f32 %v135_v37, %v133_v36 }
 0x18a   :  { %v138_v39 = vmax.f32 %v137_v38, 1e-24 }
 0x18c   :  { %279 = vrsqrt.f32 %v138_v39 }
 0x196   :  { %v280_v40 = vpop.eup %279 }
 0x197   :  { %150 = vrot.lane.b32.xlu0 %v280_v40, %s314_s0  ;;  %144 = vrot.lane.b32.xlu1 %v280_v40, %s307_s23  ;;  %v140_v41 = vmul.f32 %v280_v40, %v122_v31 }
 0x199   :  { %142 = vst.msk [vmem:[%s407_s3] sm:$0xff] %vm141_vm1, %v140_v41 }
 0x19b   :  { %156 = vrot.lane.b32.xlu1 %v280_v40, %s315_s6 }
 0x209   :  { %v151_v42 = vpop.permute.xlu0 %150  ;;  %v145_v43 = vpop.permute.xlu1 %144 }
 0x20a   :  { %v153_v44 = vmul.f32 %v151_v42, %v122_v31  ;;  %v147_v45 = vmul.f32 %v145_v43, %v122_v31 }
 0x20c   :  { %149 = vst.msk [vmem:[%s407_s3] sm:$0xff] %vm148_vm2, %v147_v45 }
 0x20d   :  { %v157_v46 = vpop.permute.xlu1 %156  ;;  %155 = vst.msk [vmem:[%s407_s3] sm:$0xff] %vm154_vm3, %v153_v44 }
 0x20e   :  { %v159_v47 = vmul.f32 %v157_v46, %v122_v31 }
 0x210   :  { %161 = vst.msk [vmem:[%s407_s3] sm:$0xff] %vm160_vm4, %v159_v47 }
 0x211   :  { %163 = vst.msk [vmem:[%s407_s3] sm:$0xff] %vm162_vm5, %v140_v41 }
 0x212   :  { %165 = vst.msk [vmem:[%s407_s3] sm:$0xff] %vm164_vm6, %v147_v45 }
 0x213   :  { %167 = vst.msk [vmem:[%s407_s3] sm:$0xff] %vm166_vm7, %v153_v44 }
 0x214   :  { %169 = vst.msk [vmem:[%s407_s3] sm:$0xff] %vm168_vm8, %v159_v47 }
 0x215   :  { %171 = vst.msk [vmem:[%s407_s3] sm:$0xff] %vm170_vm9, %v140_v41 }
 0x216   :  { %173 = vst.msk [vmem:[%s407_s3] sm:$0xff] %vm172_vm10, %v147_v45 }
 0x217   :  { %175 = vst.msk [vmem:[%s407_s3] sm:$0xff] %vm174_vm11, %v153_v44 }
 0x218   :  { %177 = vst.msk [vmem:[%s407_s3] sm:$0xff] %vm176_vm12, %v159_v47 }
 0x219   :  { %179 = vst.msk [vmem:[%s407_s3] sm:$0xff] %vm178_vm13, %v140_v41 }
 0x21a   :  { %181 = vst.msk [vmem:[%s407_s3] sm:$0xff] %vm180_vm14, %v147_v45 }
 0x21b   :  { %183 = vst.msk [vmem:[%s407_s3] sm:$0xff] %vm182_vm15, %v153_v44 }
 0x21c   :  { %185 = vst.msk [vmem:[%s407_s3] sm:$0xff] %vm184_vm0, %v159_v47 }
 0x21d   :  { %190 = vsyncpa [#allocation3], 1 }

</bundles_post_ra>
